<compile_context>
chip_gen: v5e
topology: v5e:2x2
jax: 0.10.0
libtpu: 0.0.40
codegen_flags: <defaults>
</compile_context>

<pallas_src>
import jax
import jax.numpy as jnp
from jax.experimental import pallas as pl
from jax.experimental.pallas import tpu as pltpu

_LANE = 128              # vreg lane width: last dim of every block is 128-wide
_TILE_BYTES = 4 << 20    # ~4 MiB per tile (review-recommended streaming size)
_VMEM_LIMIT = 32 << 20   # >= 2 bufs x (in + out) x 4 MiB; safe on v5e/v6e/v7x


def _mul_zero_kernel(x_ref, o_ref):
    # Multiply by a same-dtype zero constant (kept so NaN/Inf -> NaN like torch).
    o_ref[...] = x_ref[...] * jnp.zeros((), dtype=x_ref.dtype)


def _tile_rows_for(dtype) -> int:
    """Rows per (rows, 128) tile so the tile is ~_TILE_BYTES, sublane-pack safe."""
    itemsize = jnp.dtype(dtype).itemsize
    rows = _TILE_BYTES // (_LANE * itemsize)
    # Multiple of 32 sublanes covers f32 (8), bf16 (16), int8/fp8 (32) packing.
    return max(32, (rows // 32) * 32)


def _run_lane_dense(x2: jnp.ndarray) -> jnp.ndarray:
    """x2 is a lane-dense (rows, 128) view; returns x2 * 0 with unmasked stores."""
    rows, lane = x2.shape
    tile_rows = _tile_rows_for(x2.dtype)

    if rows <= tile_rows:
        # Small input: single full-extent block, no grid overhead.
        return pl.pallas_call(
            _mul_zero_kernel,
            out_shape=jax.ShapeDtypeStruct((rows, lane), x2.dtype),
            in_specs=[pl.BlockSpec((rows, lane), lambda: (0, 0))],
            out_specs=pl.BlockSpec((rows, lane), lambda: (0, 0)),
        )(x2)

    # Large input: double-buffered streaming over row tiles; ragged final
    # block is masked by Pallas, so no divisibility requirement on `rows`.
    return pl.pallas_call(
        _mul_zero_kernel,
        out_shape=jax.ShapeDtypeStruct((rows, lane), x2.dtype),
        grid=(pl.cdiv(rows, tile_rows),),
        in_specs=[pl.BlockSpec((tile_rows, lane), lambda i: (i, 0))],
        out_specs=pl.BlockSpec((tile_rows, lane), lambda i: (i, 0)),
        compiler_params=pltpu.CompilerParams(
            dimension_semantics=("parallel",),
            vmem_limit_bytes=_VMEM_LIMIT,
        ),
    )(x2)


def trivial_model_forward(x: jnp.ndarray, weight: jnp.ndarray) -> jnp.ndarray:
    """Pallas implementation of TrivialModel.forward: returns input * 0.0.

    `weight` (shape [1]) is the module's parameter; like the PyTorch module it
    is not used in forward, but is accepted for parity.
    """
    del weight  # unused in forward, exactly as in the PyTorch module

    orig_shape = x.shape
    n = x.size
    if n == 0:
        return x

    if n % _LANE == 0:
        # Lane-dense 2-D view: last dim = 128 -> full-lane, unmasked stores.
        out2 = _run_lane_dense(x.reshape(n // _LANE, _LANE))
        return out2.reshape(orig_shape)

    # Size not a multiple of 128: stream the lane-dense bulk, then handle the
    # tiny (<128 element) tail with a separate single-block call.
    x_flat = x.reshape(-1)
    n_bulk = (n // _LANE) * _LANE
    tail = x_flat[n_bulk:]
    out_tail = pl.pallas_call(
        _mul_zero_kernel,
        out_shape=jax.ShapeDtypeStruct(tail.shape, tail.dtype),
        in_specs=[pl.BlockSpec(tail.shape, lambda: (0,))],
        out_specs=pl.BlockSpec(tail.shape, lambda: (0,)),
    )(tail)
    if n_bulk == 0:
        return out_tail.reshape(orig_shape)
    out_bulk = _run_lane_dense(x_flat[:n_bulk].reshape(n_bulk // _LANE, _LANE))
    return jnp.concatenate([out_bulk.reshape(-1), out_tail]).reshape(orig_shape)


if __name__ == "__main__":
    key = jax.random.PRNGKey(0)
    k_w, k_x = jax.random.split(key)

    # Deterministic parameter init mirroring nn.Parameter(torch.randn([1])).
    weight = jax.random.normal(k_w, (1,), dtype=jnp.float32)

    # Example input: NCHW, batch=2, channels=4, spatial=16x16.
    x = jax.random.normal(k_x, (2, 4, 16, 16), dtype=jnp.float32)

    out = trivial_model_forward(x, weight)
    out = jax.block_until_ready(out)

    assert out.shape == x.shape
    assert out.dtype == x.dtype
    assert bool(jnp.all(out == 0.0))
    print("KERNEL_OK")
</pallas_src>

<mosaic_0001>
module attributes {stable_mosaic.version = 11 : i64} {
  func.func @_mul_zero_kernel(%arg0: memref<16x128xf32, #tpu.memory_space<vmem>>, %arg1: memref<16x128xf32, #tpu.memory_space<vmem>>) attributes {dimension_semantics = [], scalar_prefetch = 0 : i64, scratch_operands = 0 : i64, tpu.core_type = #tpu.core_type<tc>} {
    %c0 = arith.constant 0 : index
    %c0_0 = arith.constant 0 : index
    %0 = vector.load %arg0[%c0, %c0_0] : memref<16x128xf32, #tpu.memory_space<vmem>>, vector<16x128xf32>
    %cst = arith.constant 0.000000e+00 : f32
    %1 = vector.broadcast %cst : f32 to vector<16x128xf32>
    %2 = arith.mulf %0, %1 : vector<16x128xf32>
    %c0_1 = arith.constant 0 : index
    %c0_2 = arith.constant 0 : index
    %3 = vector.load %arg1[%c0_1, %c0_2] : memref<16x128xf32, #tpu.memory_space<vmem>>, vector<16x128xf32>
    tpu.vector_store %arg1[%c0_1, %c0_2], %2 {strides = array<i32>} : memref<16x128xf32, #tpu.memory_space<vmem>>, vector<16x128xf32>,
    return
  }
}

</mosaic_0001>

<bundles_post_ra>
// kernel: tpu_custom_call.1
= control target key start
LH: loop header
LB: loop body
LE: loop exit
PB: predicated region body
PF: predicated region fallthrough
CT: control target
= control target key end

     0   :  { %6 = vsyncpa [#allocation3], 0  ;;  %s126_s0 = inlined_call_operand.hbm [shape: f32[16,128], index: 0, kind: input, shape index: {}]   ;;  %s127_s1 = inlined_call_operand.hbm [shape: f32[16,128], index: 1, kind: output, shape index: {}]  }
   0x1   :  { %7 = vsyncpa [#allocation4], 0  ;;  %s12_s8 = sshll.u32 %s126_s0, 4  ;;  %s106_s9 = smov [#allocation2]   ;;  %s13_s8 = int_to_ptr.hbm [resolvable:$true] %s12_s8 }
   0x2   :  { %s14_s10 = sshll.u32 %s106_s9, 4  ;;  %s107_s11 = smov 128   ;;  %s15_s10 = int_to_ptr.vmem [resolvable:$true] %s14_s10 }
   0x3   :  { %s108_s12 = smov 8  }
   0x4   :  { %20 = dma.hbm_to_vmem [thread:$0]  %s13_s8, 256, %s15_s10, [#allocation3], %s107_s11, %s107_s11, %s108_s12  }
   0x5   :  { %102 = dma.done.wait [#allocation3], 256  }
   0x6   :  { %103 = vsyncadd [#allocation3], 4294967040  ;;  %s109_s13 = smov [#allocation5]   ;;  %s37_s17 = sshll.u32 %s127_s1, 4  ;;  %v25_v0 = vld [vmem:[#allocation2] sm:$0xff]  ;;  %v26_v1 = vld [vmem:[#allocation2 + $0x8] sm:$0xff]  ;;  %s38_s17 = int_to_ptr.hbm [resolvable:$true] %s37_s17 }
   0x7   :  { %s35_s14 = sshll.u32 %s109_s13, 4  ;;  %v27_v2 = vmul.f32 0.0, %v25_v0  ;;  %v28_v3 = vmul.f32 0.0, %v26_v1  ;;  %s36_s14 = int_to_ptr.vmem [resolvable:$true] %s35_s14 }
   0x9   :  { %29 = vst [vmem:[#allocation5] sm:$0xff] %v27_v2 }
   0xa   :  { %30 = vst [vmem:[#allocation5 + $0x8] sm:$0xff] %v28_v3 }
   0xb   :  { %43 = dma.vmem_to_hbm [thread:$0]  %s36_s14, 256, %s38_s17, [#allocation4], %s107_s11, %s107_s11, %s108_s12  }
   0xc   :  { %104 = dma.done.wait [#allocation4], 256  }
   0xd   :  { %105 = vsyncadd [#allocation4], 4294967040 }
   0xe   :  { %48 = vsyncpa [#allocation3], 1 }
   0xf   :  { %49 = vsyncpa [#allocation4], 1 }

</bundles_post_ra>
